<compile_context>
chip_gen: v7x
topology: tpu7x:2x2x1
jax: 0.10.0
libtpu: 0.0.40
codegen_flags: <defaults>
</compile_context>

<pallas_src>
import jax
import jax.numpy as jnp
from jax.experimental import pallas as pl
from jax.experimental.pallas import tpu as pltpu

LANE = 128
SUBLANE = 8


def _rup(n, m):
    return ((n + m - 1) // m) * m


# ----------------------------- Pallas kernel ---------------------------------

def _make_decoder_kernel(layer_out_pads, rec_out_pad, use_bn,
                         batch_real, batch_pad,
                         negative_slope=0.1, bn_eps=1e-5):
    """Kernel for len(layer_out_pads) Layer blocks + final reconstruction Linear.

    Ref order: z, W_0..W_{L-1}, W_rec, vec_pack, out
      vec_pack rows (use_bn=True):  [gamma_0, beta_0, ..., gamma_{L-1}, beta_{L-1}, b_rec]
      vec_pack rows (use_bn=False): [b_0, ..., b_{L-1}, b_rec]
    All refs are whole-array VMEM blocks.
    """
    num_layers = len(layer_out_pads)
    inv_b = 1.0 / float(batch_real)
    need_mask = use_bn and (batch_pad != batch_real)

    def kernel(*refs):
        z_ref = refs[0]
        w_refs = refs[1:1 + num_layers]
        w_rec_ref = refs[1 + num_layers]
        vec_ref = refs[2 + num_layers]
        out_ref = refs[3 + num_layers]

        vec = vec_ref[...]                      # (R, pad) packed per-feature vectors
        h = z_ref[...].astype(jnp.float32)

        if need_mask:
            row_mask = (jax.lax.broadcasted_iota(jnp.int32, (batch_pad, 1), 0)
                        < batch_real)

        for i in range(num_layers):
            d_out = layer_out_pads[i]
            w = w_refs[i][...]
            # MXU matmul: bf16 operands, f32 accumulation.
            h = jnp.dot(h.astype(w.dtype), w, preferred_element_type=jnp.float32)
            if use_bn:
                gamma = vec[2 * i:2 * i + 1, :d_out]
                beta = vec[2 * i + 1:2 * i + 2, :d_out]
                # One-pass batch stats (training-mode BN, biased variance over the
                # REAL batch; padded rows are zero so they do not contribute).
                mean = jnp.sum(h, axis=0, keepdims=True) * inv_b
                var = jnp.sum(h * h, axis=0, keepdims=True) * inv_b - mean * mean
                var = jnp.maximum(var, 0.0)              # cancellation guard
                scale = gamma * jax.lax.rsqrt(var + bn_eps)   # EUP rsqrt, fused scale
                h = (h - mean) * scale + beta
            else:
                b = vec[i:i + 1, :d_out]
                h = h + b
            # LeakyReLU(0.1)
            h = jnp.where(h > 0, h, negative_slope * h)
            if need_mask:
                # keep padded rows exactly zero for the next layer's batch stats
                h = jnp.where(row_mask, h, 0.0)

        w_rec = w_rec_ref[...]
        b_row = 2 * num_layers if use_bn else num_layers
        b_rec = vec[b_row:b_row + 1, :rec_out_pad]
        out_ref[...] = (jnp.dot(h.astype(w_rec.dtype), w_rec,
                                preferred_element_type=jnp.float32)
                        + b_rec).astype(out_ref.dtype)

    return kernel


# ----------------------------- Decoder wrapper --------------------------------

class DecoderPallas:
    """JAX/Pallas port of the PyTorch Decoder module (forward pass)."""

    def __init__(self, embedding_sizes, cont_vars, layer_sizes, latent_dim,
                 batch_norm=True, key=None):
        self.embedding_sizes = list(embedding_sizes)
        self.cont_vars = list(cont_vars)
        self.latent_dim = int(latent_dim)
        self.batch_norm = bool(batch_norm)

        # hidden_dims = [latent_dim] + reversed(layer_sizes)
        hidden_dims = [self.latent_dim] + [int(s) for s in reversed(layer_sizes.split(","))]
        self.hidden_dims = hidden_dims
        self.out_dim = sum(e for _, e in self.embedding_sizes) + len(self.cont_vars)

        if key is None:
            key = jax.random.PRNGKey(0)

        # ------------------- unpadded parameters (reference) -------------------
        hidden = []
        for i in range(len(hidden_dims) - 1):
            d_in, d_out = hidden_dims[i], hidden_dims[i + 1]
            key, kw, kb = jax.random.split(key, 3)
            bound = 1.0 / (d_in ** 0.5)
            W = jax.random.uniform(kw, (d_in, d_out), jnp.float32, -bound, bound)
            lp = {"W": W.astype(jnp.bfloat16)}           # bf16 weights feed the MXU
            if self.batch_norm:
                # Linear bias omitted: exactly cancelled by training-mode BN mean.
                lp["gamma"] = jnp.ones((1, d_out), jnp.float32)
                lp["beta"] = jnp.zeros((1, d_out), jnp.float32)
            else:
                lp["b"] = jax.random.uniform(kb, (1, d_out), jnp.float32, -bound, bound)
            hidden.append(lp)

        d_last = hidden_dims[-1]
        key, kw, kb = jax.random.split(key, 3)
        bound = 1.0 / (d_last ** 0.5)
        rec = {
            "W": jax.random.uniform(kw, (d_last, self.out_dim), jnp.float32,
                                    -bound, bound).astype(jnp.bfloat16),
            "b": jax.random.uniform(kb, (1, self.out_dim), jnp.float32, -bound, bound),
        }
        self.params = {"hidden": hidden, "rec": rec}

        # ------------------- lane-padded operands for the kernel ---------------
        self.in_pads = [_rup(d, LANE) for d in hidden_dims]            # per-layer in
        self.layer_out_pads = [_rup(d, LANE) for d in hidden_dims[1:]]  # per-layer out
        self.rec_out_pad = _rup(self.out_dim, LANE)
        vec_width = max(self.layer_out_pads + [self.rec_out_pad])

        def pad2(a, rows, cols):
            return jnp.pad(a, ((0, rows - a.shape[0]), (0, cols - a.shape[1])))

        self._w_pad = []
        vec_rows = []
        for i, lp in enumerate(hidden):
            d_in_pad, d_out_pad = self.in_pads[i], self.layer_out_pads[i]
            self._w_pad.append(pad2(lp["W"], d_in_pad, d_out_pad))
            if self.batch_norm:
                vec_rows.append(pad2(lp["gamma"], 1, vec_width)[0])
                vec_rows.append(pad2(lp["beta"], 1, vec_width)[0])
            else:
                vec_rows.append(pad2(lp["b"], 1, vec_width)[0])
        self._w_rec_pad = pad2(rec["W"], self.in_pads[-1] if False else _rup(d_last, LANE),
                               self.rec_out_pad)
        vec_rows.append(pad2(rec["b"], 1, vec_width)[0])
        self._vec_pack = jnp.stack(vec_rows, axis=0)     # (2L+1, vec_width) single operand

        self._kernel_cache = {}

    # ------------------------------- forward ----------------------------------
    def __call__(self, z):
        B = z.shape[0]
        B_pad = _rup(B, SUBLANE)
        latent_pad = self.in_pads[0]

        z_pad = jnp.pad(z.astype(jnp.float32),
                        ((0, B_pad - B), (0, latent_pad - z.shape[1])))

        key = (B, B_pad)
        if key not in self._kernel_cache:
            self._kernel_cache[key] = _make_decoder_kernel(
                tuple(self.layer_out_pads), self.rec_out_pad, self.batch_norm,
                batch_real=B, batch_pad=B_pad)
        kernel = self._kernel_cache[key]

        operands = [z_pad] + list(self._w_pad) + [self._w_rec_pad, self._vec_pack]
        vmem_spec = pl.BlockSpec(memory_space=pltpu.MemorySpace.VMEM)

        out_pad = pl.pallas_call(
            kernel,
            out_shape=jax.ShapeDtypeStruct((B_pad, self.rec_out_pad), jnp.float32),
            in_specs=[vmem_spec] * len(operands),
            out_specs=vmem_spec,
        )(*operands)
        return out_pad[:B, :self.out_dim]

    # Pure-JAX reference (same math: bias-free Linear + one-pass training BN +
    # LeakyReLU(0.1), bf16 MXU casts, clamped variance).
    def reference(self, z):
        p = self.params
        h = z.astype(jnp.float32)
        for lp in p["hidden"]:
            h = jnp.dot(h.astype(jnp.bfloat16), lp["W"],
                        preferred_element_type=jnp.float32)
            if self.batch_norm:
                mean = jnp.mean(h, axis=0, keepdims=True)
                var = jnp.maximum(jnp.mean(h * h, axis=0, keepdims=True) - mean * mean, 0.0)
                h = (h - mean) * (lp["gamma"] * jax.lax.rsqrt(var + 1e-5)) + lp["beta"]
            else:
                h = h + lp["b"]
            h = jnp.where(h > 0, h, 0.1 * h)
        out = jnp.dot(h.astype(jnp.bfloat16), p["rec"]["W"],
                      preferred_element_type=jnp.float32) + p["rec"]["b"]
        return out


# ----------------------------------- main -------------------------------------

if __name__ == "__main__":
    key = jax.random.PRNGKey(0)

    # Hyperparameters consistent with the module's __init__:
    embedding_sizes = [(10, 4), (7, 3)]          # -> contributes 7 to out_dim
    cont_vars = ["c0", "c1", "c2", "c3", "c4"]   # -> contributes 5 to out_dim
    layer_sizes = "32,16"                        # decoder hidden dims: [8, 16, 32]
    latent_dim = 8
    batch = 8

    dec = DecoderPallas(embedding_sizes, cont_vars, layer_sizes, latent_dim,
                        batch_norm=True, key=jax.random.PRNGKey(42))

    key, kz = jax.random.split(key)
    z = jax.random.normal(kz, (batch, latent_dim), jnp.float32)

    out = dec(z)
    jax.block_until_ready(out)

    # sanity-check against pure-JAX reference
    out_ref = dec.reference(z)
    assert out.shape == (batch, dec.out_dim), "bad output shape"
    assert jnp.allclose(out, out_ref, atol=1e-3, rtol=1e-3), "decoder output mismatch"

    print("KERNEL_OK")
</pallas_src>

<mosaic_0001>
module attributes {stable_mosaic.version = 11 : i64} {
  func.func @kernel(%arg0: memref<8x128xf32, #tpu.memory_space<vmem>>, %arg1: memref<128x128xbf16, #tpu.memory_space<vmem>>, %arg2: memref<128x128xbf16, #tpu.memory_space<vmem>>, %arg3: memref<128x128xbf16, #tpu.memory_space<vmem>>, %arg4: memref<5x128xf32, #tpu.memory_space<vmem>>, %arg5: memref<8x128xf32, #tpu.memory_space<vmem>>) attributes {dimension_semantics = [], scalar_prefetch = 0 : i64, scratch_operands = 0 : i64, tpu.core_type = #tpu.core_type<tc>} {
    %c0 = arith.constant 0 : index
    %c0_0 = arith.constant 0 : index
    %0 = vector.load %arg4[%c0, %c0_0] : memref<5x128xf32, #tpu.memory_space<vmem>>, vector<5x128xf32>
    %c0_1 = arith.constant 0 : index
    %c0_2 = arith.constant 0 : index
    %1 = vector.load %arg0[%c0_1, %c0_2] : memref<8x128xf32, #tpu.memory_space<vmem>>, vector<8x128xf32>
    %c0_3 = arith.constant 0 : index
    %c0_4 = arith.constant 0 : index
    %2 = vector.load %arg1[%c0_3, %c0_4] : memref<128x128xbf16, #tpu.memory_space<vmem>>, vector<128x128xbf16>
    %3 = arith.truncf %1 : vector<8x128xf32> to vector<8x128xbf16>
    %cst = arith.constant dense<0.000000e+00> : vector<8x128xf32>
    %4 = tpu.matmul %3, %2, %cst {dimension_numbers = #tpu.dot_dimension_numbers<[1], [0], [0], [1], [0, 0, 1, 1], [], []>} : vector<8x128xbf16>, vector<128x128xbf16>, vector<8x128xf32> -> vector<8x128xf32>
    %5 = vector.extract_strided_slice %0 {offsets = [0, 0], sizes = [1, 128], strides = [1, 1]} : vector<5x128xf32> to vector<1x128xf32>
    %6 = vector.extract_strided_slice %0 {offsets = [1, 0], sizes = [1, 128], strides = [1, 1]} : vector<5x128xf32> to vector<1x128xf32>
    %cst_5 = arith.constant dense<0.000000e+00> : vector<128xf32>
    %7 = vector.multi_reduction <add>, %4, %cst_5 [0] : vector<8x128xf32> to vector<128xf32>
    %8 = vector.shape_cast %7 : vector<128xf32> to vector<1x128xf32>
    %cst_6 = arith.constant 1.250000e-01 : f32
    %9 = vector.broadcast %cst_6 : f32 to vector<1x128xf32>
    %10 = arith.mulf %8, %9 : vector<1x128xf32>
    %11 = arith.mulf %4, %4 : vector<8x128xf32>
    %cst_7 = arith.constant dense<0.000000e+00> : vector<128xf32>
    %12 = vector.multi_reduction <add>, %11, %cst_7 [0] : vector<8x128xf32> to vector<128xf32>
    %13 = vector.shape_cast %12 : vector<128xf32> to vector<1x128xf32>
    %cst_8 = arith.constant 1.250000e-01 : f32
    %14 = vector.broadcast %cst_8 : f32 to vector<1x128xf32>
    %15 = arith.mulf %13, %14 : vector<1x128xf32>
    %16 = arith.mulf %10, %10 : vector<1x128xf32>
    %17 = arith.subf %15, %16 : vector<1x128xf32>
    %cst_9 = arith.constant 0.000000e+00 : f32
    %18 = vector.broadcast %cst_9 : f32 to vector<1x128xf32>
    %19 = arith.maximumf %17, %18 : vector<1x128xf32>
    %cst_10 = arith.constant 9.99999974E-6 : f32
    %20 = vector.broadcast %cst_10 : f32 to vector<1x128xf32>
    %21 = arith.addf %19, %20 : vector<1x128xf32>
    %22 = math.rsqrt %21 : vector<1x128xf32>
    %23 = arith.mulf %5, %22 : vector<1x128xf32>
    %24 = vector.broadcast %10 : vector<1x128xf32> to vector<8x128xf32>
    %25 = arith.subf %4, %24 : vector<8x128xf32>
    %26 = vector.broadcast %23 : vector<1x128xf32> to vector<8x128xf32>
    %27 = arith.mulf %25, %26 : vector<8x128xf32>
    %28 = vector.broadcast %6 : vector<1x128xf32> to vector<8x128xf32>
    %29 = arith.addf %27, %28 : vector<8x128xf32>
    %cst_11 = arith.constant 0.000000e+00 : f32
    %30 = vector.broadcast %cst_11 : f32 to vector<8x128xf32>
    %31 = arith.cmpf ogt, %29, %30 : vector<8x128xf32>
    %cst_12 = arith.constant 1.000000e-01 : f32
    %32 = vector.broadcast %cst_12 : f32 to vector<8x128xf32>
    %33 = arith.mulf %32, %29 : vector<8x128xf32>
    %34 = arith.select %31, %29, %33 : vector<8x128xi1>, vector<8x128xf32>
    %c0_13 = arith.constant 0 : index
    %c0_14 = arith.constant 0 : index
    %35 = vector.load %arg2[%c0_13, %c0_14] : memref<128x128xbf16, #tpu.memory_space<vmem>>, vector<128x128xbf16>
    %36 = arith.truncf %34 : vector<8x128xf32> to vector<8x128xbf16>
    %cst_15 = arith.constant dense<0.000000e+00> : vector<8x128xf32>
    %37 = tpu.matmul %36, %35, %cst_15 {dimension_numbers = #tpu.dot_dimension_numbers<[1], [0], [0], [1], [0, 0, 1, 1], [], []>} : vector<8x128xbf16>, vector<128x128xbf16>, vector<8x128xf32> -> vector<8x128xf32>
    %38 = vector.extract_strided_slice %0 {offsets = [2, 0], sizes = [1, 128], strides = [1, 1]} : vector<5x128xf32> to vector<1x128xf32>
    %39 = vector.extract_strided_slice %0 {offsets = [3, 0], sizes = [1, 128], strides = [1, 1]} : vector<5x128xf32> to vector<1x128xf32>
    %cst_16 = arith.constant dense<0.000000e+00> : vector<128xf32>
    %40 = vector.multi_reduction <add>, %37, %cst_16 [0] : vector<8x128xf32> to vector<128xf32>
    %41 = vector.shape_cast %40 : vector<128xf32> to vector<1x128xf32>
    %cst_17 = arith.constant 1.250000e-01 : f32
    %42 = vector.broadcast %cst_17 : f32 to vector<1x128xf32>
    %43 = arith.mulf %41, %42 : vector<1x128xf32>
    %44 = arith.mulf %37, %37 : vector<8x128xf32>
    %cst_18 = arith.constant dense<0.000000e+00> : vector<128xf32>
    %45 = vector.multi_reduction <add>, %44, %cst_18 [0] : vector<8x128xf32> to vector<128xf32>
    %46 = vector.shape_cast %45 : vector<128xf32> to vector<1x128xf32>
    %cst_19 = arith.constant 1.250000e-01 : f32
    %47 = vector.broadcast %cst_19 : f32 to vector<1x128xf32>
    %48 = arith.mulf %46, %47 : vector<1x128xf32>
    %49 = arith.mulf %43, %43 : vector<1x128xf32>
    %50 = arith.subf %48, %49 : vector<1x128xf32>
    %cst_20 = arith.constant 0.000000e+00 : f32
    %51 = vector.broadcast %cst_20 : f32 to vector<1x128xf32>
    %52 = arith.maximumf %50, %51 : vector<1x128xf32>
    %cst_21 = arith.constant 9.99999974E-6 : f32
    %53 = vector.broadcast %cst_21 : f32 to vector<1x128xf32>
    %54 = arith.addf %52, %53 : vector<1x128xf32>
    %55 = math.rsqrt %54 : vector<1x128xf32>
    %56 = arith.mulf %38, %55 : vector<1x128xf32>
    %57 = vector.broadcast %43 : vector<1x128xf32> to vector<8x128xf32>
    %58 = arith.subf %37, %57 : vector<8x128xf32>
    %59 = vector.broadcast %56 : vector<1x128xf32> to vector<8x128xf32>
    %60 = arith.mulf %58, %59 : vector<8x128xf32>
    %61 = vector.broadcast %39 : vector<1x128xf32> to vector<8x128xf32>
    %62 = arith.addf %60, %61 : vector<8x128xf32>
    %cst_22 = arith.constant 0.000000e+00 : f32
    %63 = vector.broadcast %cst_22 : f32 to vector<8x128xf32>
    %64 = arith.cmpf ogt, %62, %63 : vector<8x128xf32>
    %cst_23 = arith.constant 1.000000e-01 : f32
    %65 = vector.broadcast %cst_23 : f32 to vector<8x128xf32>
    %66 = arith.mulf %65, %62 : vector<8x128xf32>
    %67 = arith.select %64, %62, %66 : vector<8x128xi1>, vector<8x128xf32>
    %c0_24 = arith.constant 0 : index
    %c0_25 = arith.constant 0 : index
    %68 = vector.load %arg3[%c0_24, %c0_25] : memref<128x128xbf16, #tpu.memory_space<vmem>>, vector<128x128xbf16>
    %69 = vector.extract_strided_slice %0 {offsets = [4, 0], sizes = [1, 128], strides = [1, 1]} : vector<5x128xf32> to vector<1x128xf32>
    %70 = arith.truncf %67 : vector<8x128xf32> to vector<8x128xbf16>
    %cst_26 = arith.constant dense<0.000000e+00> : vector<8x128xf32>
    %71 = tpu.matmul %70, %68, %cst_26 {dimension_numbers = #tpu.dot_dimension_numbers<[1], [0], [0], [1], [0, 0, 1, 1], [], []>} : vector<8x128xbf16>, vector<128x128xbf16>, vector<8x128xf32> -> vector<8x128xf32>
    %72 = vector.broadcast %69 : vector<1x128xf32> to vector<8x128xf32>
    %73 = arith.addf %71, %72 : vector<8x128xf32>
    %c0_27 = arith.constant 0 : index
    %c0_28 = arith.constant 0 : index
    %74 = vector.load %arg5[%c0_27, %c0_28] : memref<8x128xf32, #tpu.memory_space<vmem>>, vector<8x128xf32>
    tpu.vector_store %arg5[%c0_27, %c0_28], %73 {strides = array<i32>} : memref<8x128xf32, #tpu.memory_space<vmem>>, vector<8x128xf32>,
    return
  }
}

</mosaic_0001>

<bundles_post_ra>
// kernel: tpu_custom_call.1
= control target key start
LH: loop header
LB: loop body
LE: loop exit
PB: predicated region body
PF: predicated region fallthrough
CT: control target
= control target key end

     0   :  { %10 = vsyncpa [#allocation3], 0  ;;  %s905_s0 = inlined_call_operand.hbm [shape: f32[8,128], index: 0, kind: input, shape index: {}]   ;;  %s906_s1 = inlined_call_operand.hbm [shape: bf16[128,128], index: 1, kind: input, shape index: {}]   ;;  %s907_s2 = inlined_call_operand.hbm [shape: bf16[128,128], index: 2, kind: input, shape index: {}]   ;;  %s908_s3 = inlined_call_operand.hbm [shape: bf16[128,128], index: 3, kind: input, shape index: {}]   ;;  %s909_s4 = inlined_call_operand.vmem [shape: f32[5,128], index: 4, kind: input, shape index: {}]   ;;  %s910_s5 = inlined_call_operand.hbm [shape: f32[8,128], index: 5, kind: output, shape index: {}]  }
   0x1   :  { %11 = vsyncpa [#allocation6], 0 }
   0x2   :  { %12 = vsyncpa [#allocation9], 0 }
   0x3   :  { %13 = vsyncpa [#allocation4], 0  ;;  %s750_s18 = smov [#allocation5]   ;;  %s632_s22 = scalar_lea.hbm %s906_s1, 1024 }
   0x4   :  { %s29_s19 = sshll.u32 %s750_s18, 4  ;;  %p633_p0 = scmp.ne.s32.totalorder %s906_s1, %s632_s22  ;;  %s30_s19 = int_to_ptr.vmem [resolvable:$true] %s29_s19 }
   0x5   :  { %p636_p1 = scmp.lt.u32.totalorder %s632_s22, %s906_s1 }
   0x7   :  { %p638_p2 = pnand %p636_p1, %p633_p0 }
   0x9   :  { %641 = shalt.err (!%p638_p2)
}
   0xa   :  { %s642_s27 = scalar_lea.vmem %s30_s19, 1024  ;;  %p647_p4 = scmp.lt.s32.totalorder %s30_s19, %s30_s19 }
   0xb   :  { %p643_p3 = scmp.ne.s32.totalorder %s30_s19, %s642_s27  ;;  %p648_p5 = scmp.lt.s32.totalorder %s642_s27, %s642_s27 }
   0xd   :  { %p649_p6 = por %p648_p5, %p647_p4 }
   0xf   :  { %p650_p7 = pnand %p649_p6, %p643_p3 }
  0x11   :  { %653 = shalt.err (!%p650_p7)
}
  0x12   :  { %s751_s28 = smov 64   ;;  %s752_s29 = smov 4  }
  0x13   :  { %35 = dma.hbm_to_vmem [thread:$0]  %s906_s1, 1024, %s30_s19, [#allocation6], %s751_s28, %s751_s28, %s752_s29  }
  0x14   :  { %s753_s7 = smov [#allocation2]   ;;  %s754_s9 = smov [#allocation7]  }
  0x15   :  { %s20_s8 = sshll.u32 %s753_s7, 4  ;;  %s41_s10 = sshll.u32 %s754_s9, 4  ;;  %s21_s8 = int_to_ptr.vmem [resolvable:$true] %s20_s8  ;;  %s42_s10 = int_to_ptr.vmem [resolvable:$true] %s41_s10 }
  0x16   :  { %s654_s13 = scalar_lea.hbm %s905_s0, 128 }
  0x17   :  { %p655_p8 = scmp.ne.s32.totalorder %s905_s0, %s654_s13  ;;  %p658_p9 = scmp.lt.u32.totalorder %s654_s13, %s905_s0 }
  0x19   :  { %p660_p10 = pnand %p658_p9, %p655_p8 }
  0x1b   :  { %663 = shalt.err (!%p660_p10)
}
  0x1c   :  { %s664_s1 = scalar_lea.vmem %s21_s8, 128  ;;  %p669_p12 = scmp.lt.s32.totalorder %s21_s8, %s21_s8 }
  0x1d   :  { %p665_p11 = scmp.ne.s32.totalorder %s21_s8, %s664_s1  ;;  %p670_p13 = scmp.lt.s32.totalorder %s664_s1, %s664_s1 }
  0x1f   :  { %p671_p0 = por %p670_p13, %p669_p12 }
  0x21   :  { %p672_p1 = pnand %p671_p0, %p665_p11 }
  0x23   :  { %675 = shalt.err (!%p672_p1)
}
  0x24   :  { %23 = dma.hbm_to_vmem [thread:$0]  %s905_s0, 128, %s21_s8, [#allocation3]  }
  0x25   :  { %s676_s22 = scalar_lea.hbm %s907_s2, 1024 }
  0x26   :  { %p677_p2 = scmp.ne.s32.totalorder %s907_s2, %s676_s22  ;;  %p680_p3 = scmp.lt.u32.totalorder %s676_s22, %s907_s2 }
  0x28   :  { %p682_p4 = pnand %p680_p3, %p677_p2 }
  0x2a   :  { %685 = shalt.err (!%p682_p4)
}
  0x2b   :  { %s686_s27 = scalar_lea.vmem %s42_s10, 1024  ;;  %p691_p6 = scmp.lt.s32.totalorder %s42_s10, %s42_s10 }
  0x2c   :  { %p687_p5 = scmp.ne.s32.totalorder %s42_s10, %s686_s27  ;;  %p692_p7 = scmp.lt.s32.totalorder %s686_s27, %s686_s27 }
  0x2e   :  { %p693_p8 = por %p692_p7, %p691_p6 }
  0x30   :  { %p694_p9 = pnand %p693_p8, %p687_p5 }
  0x32   :  { %697 = shalt.err (!%p694_p9)
}
  0x33   :  { %47 = dma.hbm_to_vmem [thread:$0]  %s907_s2, 1024, %s42_s10, [#allocation6], %s751_s28, %s751_s28, %s752_s29  }
  0x34   :  { %s755_s6 = smov [#allocation8]   ;;  %s698_s11 = scalar_lea.hbm %s908_s3, 1024 }
  0x35   :  { %s53_s7 = sshll.u32 %s755_s6, 4  ;;  %p699_p10 = scmp.ne.s32.totalorder %s908_s3, %s698_s11  ;;  %s54_s7 = int_to_ptr.vmem [resolvable:$true] %s53_s7 }
  0x36   :  { %p702_p11 = scmp.lt.u32.totalorder %s698_s11, %s908_s3 }
  0x38   :  { %p704_p12 = pnand %p702_p11, %p699_p10 }
  0x3a   :  { %707 = shalt.err (!%p704_p12)
}
  0x3b   :  { %s708_s16 = scalar_lea.vmem %s54_s7, 1024  ;;  %p713_p0 = scmp.lt.s32.totalorder %s54_s7, %s54_s7 }
  0x3c   :  { %p709_p13 = scmp.ne.s32.totalorder %s54_s7, %s708_s16  ;;  %p714_p1 = scmp.lt.s32.totalorder %s708_s16, %s708_s16 }
  0x3e   :  { %p715_p2 = por %p714_p1, %p713_p0 }
  0x40   :  { %p716_p3 = pnand %p715_p2, %p709_p13 }
  0x42   :  { %719 = shalt.err (!%p716_p3)
}
  0x43   :  { %59 = dma.hbm_to_vmem [thread:$0]  %s908_s3, 1024, %s54_s7, [#allocation9], %s751_s28, %s751_s28, %s752_s29  }
  0x44   :  { %742 = dma.done.wait [#allocation3], 128  }
  0x45   :  { %743 = vsyncadd [#allocation3], 4294967168 }
  0x46   :  { %744 = dma.done.wait [#allocation6], 2048  }
  0x47   :  { %745 = vsyncadd [#allocation6], 4294965248 }
  0x48   :  { %746 = dma.done.wait [#allocation9], 1024  }
  0x49   :  { %747 = vsyncadd [#allocation9], 4294966272  ;;  %v756_v0 = vmov 0.0   ;;  %vm757_vm0 = vmmov 0   ;;  %v604_v1 = vld [vmem:[#allocation5] sm:$0xff]   ;;  %v605_v2 = vld [vmem:[#allocation5 + $0x8] sm:$0xff]   ;;  %v204_v42 = vlaneseq }
  0x4a   :  { %535 = vmatprep.subr.bf16.mxu0 %v756_v0  ;;  %551 = vmatprep.mubr.msk.bf16.mxu0 %vm757_vm0, %v756_v0  ;;  %v606_v3 = vld [vmem:[#allocation5 + $0x10] sm:$0xff]   ;;  %v607_v4 = vld [vmem:[#allocation5 + $0x18] sm:$0xff]   ;;  %v608_v5 = vld [vmem:[#allocation5 + $0x20] sm:$0xff]  }
  0x4b   :  { %555 = vmatprep.subr.bf16.mxu1 %v756_v0  ;;  %571 = vmatprep.mubr.msk.bf16.mxu1 %vm757_vm0, %v756_v0  ;;  %v609_v6 = vld [vmem:[#allocation5 + $0x28] sm:$0xff]   ;;  %v610_v7 = vld [vmem:[#allocation5 + $0x30] sm:$0xff]   ;;  %v611_v8 = vld [vmem:[#allocation5 + $0x38] sm:$0xff]   ;;  %v869_v43 = vshrl.u32 %v204_v42, 7 }
  0x4c   :  { %536 = vmatpush3.bf16.msra.mxu0 %v604_v1  ;;  %v76_v9 = vld [vmem:[#allocation2] sm:$0xff]  ;;  %v612_v11 = vld [vmem:[#allocation7] sm:$0xff]   ;;  %v613_v12 = vld [vmem:[#allocation7 + $0x8] sm:$0xff]  }
  0x4d   :  { %537 = vmatprep.subr.bf16.mxu0 %v756_v0  ;;  %v93_v10 = vpack.c.bf16 %v76_v9, %v76_v9  ;;  %556 = vmatpush3.bf16.msra.mxu1 %v612_v11  ;;  %v614_v13 = vld [vmem:[#allocation7 + $0x10] sm:$0xff]   ;;  %v615_v14 = vld [vmem:[#allocation7 + $0x18] sm:$0xff]   ;;  %v616_v15 = vld [vmem:[#allocation7 + $0x20] sm:$0xff]   ;;  %v206_v45 = vsub.s32 0, %v869_v43  ;;  %v211_v46 = vsub.s32 1, %v869_v43 }
  0x4e   :  { %557 = vmatprep.subr.bf16.mxu1 %v756_v0  ;;  %v617_v16 = vld [vmem:[#allocation7 + $0x28] sm:$0xff]   ;;  %v618_v17 = vld [vmem:[#allocation7 + $0x30] sm:$0xff]   ;;  %v619_v18 = vld [vmem:[#allocation7 + $0x38] sm:$0xff]  }
  0x4f   :  { %v874_v44 = vld [vmem:[%s909_s4] sm:$0x1f]  ;;  %v620_v57 = vld [vmem:[#allocation8] sm:$0xff]   ;;  %v621_v58 = vld [vmem:[#allocation8 + $0x8] sm:$0xff]   ;;  %s758_s4 = smov [#allocation10]  }
  0x50   :  { %538 = vmatpush3.bf16.msra.mxu0 %v605_v2  ;;  %v212_v51 = vrot.slane %v874_v44, %v211_v46  ;;  %v622_v59 = vld [vmem:[#allocation8 + $0x10] sm:$0xff]   ;;  %v623_v60 = vld [vmem:[#allocation8 + $0x18] sm:$0xff]   ;;  %v624_v61 = vld [vmem:[#allocation8 + $0x20] sm:$0xff]   ;;  %s473_s29 = sshll.u32 %s758_s4, 4  ;;  %s474_s29 = int_to_ptr.vmem [resolvable:$true] %s473_s29 }
  0x51   :  { %539 = vmatprep.subr.bf16.mxu0 %v756_v0  ;;  %558 = vmatpush3.bf16.msra.mxu1 %v613_v12  ;;  %v625_v62 = vld [vmem:[#allocation8 + $0x28] sm:$0xff]   ;;  %v626_v63 = vld [vmem:[#allocation8 + $0x30] sm:$0xff]   ;;  %v627_v1 = vld [vmem:[#allocation8 + $0x38] sm:$0xff]   ;;  %s720_s17 = scalar_lea.vmem %s474_s29, 128  ;;  %p725_p5 = scmp.lt.s32.totalorder %s474_s29, %s474_s29 }
  0x52   :  { %559 = vmatprep.subr.bf16.mxu1 %v756_v0  ;;  %p721_p4 = scmp.ne.s32.totalorder %s474_s29, %s720_s17  ;;  %p726_p6 = scmp.lt.s32.totalorder %s720_s17, %s720_s17 }
  0x54   :  { %540 = vmatpush3.bf16.msra.mxu0 %v606_v3  ;;  %p727_p7 = por %p726_p6, %p725_p5 }
  0x55   :  { %541 = vmatprep.subr.bf16.mxu0 %v756_v0  ;;  %560 = vmatpush3.bf16.msra.mxu1 %v614_v13 }
  0x56   :  { %561 = vmatprep.subr.bf16.mxu1 %v756_v0  ;;  %p728_p8 = pnand %p727_p7, %p721_p4 }
  0x58   :  { %542 = vmatpush3.bf16.msra.mxu0 %v607_v4 }
  0x59   :  { %543 = vmatprep.subr.bf16.mxu0 %v756_v0  ;;  %562 = vmatpush3.bf16.msra.mxu1 %v615_v14 }
  0x5a   :  { %563 = vmatprep.subr.bf16.mxu1 %v756_v0 }
  0x5c   :  { %544 = vmatpush3.bf16.msra.mxu0 %v608_v5 }
  0x5d   :  { %545 = vmatprep.subr.bf16.mxu0 %v756_v0  ;;  %564 = vmatpush3.bf16.msra.mxu1 %v616_v15 }
  0x5e   :  { %565 = vmatprep.subr.bf16.mxu1 %v756_v0 }
  0x60   :  { %546 = vmatpush3.bf16.msra.mxu0 %v609_v6 }
  0x61   :  { %547 = vmatprep.subr.bf16.mxu0 %v756_v0  ;;  %566 = vmatpush3.bf16.msra.mxu1 %v617_v16 }
  0x62   :  { %567 = vmatprep.subr.bf16.mxu1 %v756_v0 }
  0x64   :  { %548 = vmatpush3.bf16.msra.mxu0 %v610_v7 }
  0x65   :  { %549 = vmatprep.subr.bf16.mxu0 %v756_v0  ;;  %568 = vmatpush3.bf16.msra.mxu1 %v618_v17 }
  0x66   :  { %569 = vmatprep.subr.bf16.mxu1 %v756_v0 }
  0x68   :  { %550 = vmatpush3.bf16.msra.mxu0 %v611_v8 }
  0x69   :  { %575 = vmatprep.subr.bf16.mxu0 %v756_v0  ;;  %570 = vmatpush3.bf16.msra.mxu1 %v619_v18 }
  0x6b   :  { %552 = vmatmul.mubr.bf16.vlgmr.msra.gmra.mrb[0].mxu0 %v93_v10 }
  0x6c   :  { %591 = vmatprep.mubr.msk.bf16.mxu0 %vm757_vm0, %v756_v0  ;;  %576 = vmatpush3.bf16.msra.mxu0 %v620_v57 }
  0x6d   :  { %577 = vmatprep.subr.bf16.mxu0 %v756_v0 }
  0x70   :  { %578 = vmatpush3.bf16.msra.mxu0 %v621_v58 }
  0x71   :  { %579 = vmatprep.subr.bf16.mxu0 %v756_v0 }
  0x74   :  { %580 = vmatpush3.bf16.msra.mxu0 %v622_v59 }
  0x75   :  { %581 = vmatprep.subr.bf16.mxu0 %v756_v0 }
  0x78   :  { %582 = vmatpush3.bf16.msra.mxu0 %v623_v60 }
  0x79   :  { %583 = vmatprep.subr.bf16.mxu0 %v756_v0 }
  0x7c   :  { %584 = vmatpush3.bf16.msra.mxu0 %v624_v61 }
  0x7d   :  { %585 = vmatprep.subr.bf16.mxu0 %v756_v0 }
  0x80   :  { %586 = vmatpush3.bf16.msra.mxu0 %v625_v62 }
  0x81   :  { %587 = vmatprep.subr.bf16.mxu0 %v756_v0 }
  0x84   :  { %588 = vmatpush3.bf16.msra.mxu0 %v626_v63 }
  0x85   :  { %589 = vmatprep.subr.bf16.mxu0 %v756_v0 }
  0x88   :  { %590 = vmatpush3.bf16.msra.mxu0 %v627_v1 }
 0x13e   :  { %v176_v19 = vpop.f32.mrb[0].mxu0 }
 0x13f   :  { %v182_v20 = vrot.slane %v176_v19, 4  ;;  %v189_v21 = vmul.f32 %v176_v19, %v176_v19  ;;  %v553_v22 = vpop.f32.mrb[1].mxu0 }
 0x140   :  { %v179_v23 = vpop.f32.mrb[2].mxu0 }
 0x141   :  { %v183_v24 = vadd.f32 %v182_v20, %v176_v19  ;;  %v190_v25 = vrot.slane %v189_v21, 4  ;;  %v554_v26 = vpop.f32.mrb[3].mxu0 }
 0x143   :  { %v184_v27 = vrot.slane %v183_v24, 2  ;;  %v191_v28 = vadd.f32 %v190_v25, %v189_v21  ;;  %v351_v25 = vsub.s32 3, %v869_v43 }
 0x145   :  { %v185_v29 = vadd.f32 %v184_v27, %v183_v24  ;;  %v192_v30 = vrot.slane %v191_v28, 2  ;;  %v346_v24 = vsub.s32 2, %v869_v43 }
 0x147   :  { %v186_v31 = vrot.slane %v185_v29, 1  ;;  %v193_v32 = vadd.f32 %v192_v30, %v191_v28  ;;  %v352_v30 = vrot.slane %v874_v44, %v351_v25 }
 0x149   :  { %v187_v33 = vadd.f32 %v186_v31, %v185_v29  ;;  %v194_v34 = vrot.slane %v193_v32, 1 }
 0x14b   :  { %v188_v35 = vmul.f32 0.125, %v187_v33  ;;  %v195_v36 = vadd.f32 %v194_v34, %v193_v32 }
 0x14d   :  { %v196_v37 = vmul.f32 0.125, %v195_v36  ;;  %v197_v38 = vmul.f32 %v188_v35, %v188_v35  ;;  %v203_v49 = vsub.f32 %v176_v19, %v188_v35  ;;  %v376_v36 = vsub.s32 4, %v869_v43 }
 0x14f   :  { %v198_v39 = vsub.f32 %v196_v37, %v197_v38  ;;  %v377_v37 = vrot.slane %v874_v44, %v376_v36 }
 0x151   :  { %v199_v40 = vmax.f32 %v198_v39, 0.0 }
 0x153   :  { %v200_v41 = vadd.f32 1e-05, %v199_v40 }
 0x155   :  { %628 = vrsqrt.f32 %v200_v41 }
 0x15f   :  { %v629_v47 = vpop.eup %628 }
 0x160   :  { %v202_v48 = vmul.f32 %v629_v47, %v874_v44 }
 0x162   :  { %v207_v50 = vrot.slane %v202_v48, %v206_v45 }
 0x164   :  { %v208_v52 = vmul.f32 %v207_v50, %v203_v49 }
 0x166   :  { %v213_v53 = vadd.f32 %v212_v51, %v208_v52 }
 0x168   :  { %vm214_vm1 = vcmp.gt.f32.partialorder %v213_v53, 0.0  ;;  %v215_v54 = vmul.f32 0.1, %v213_v53 }
 0x16a   :  { %v216_v55 = vsel %vm214_vm1, %v213_v53, %v215_v54 }
 0x16b   :  { %v233_v56 = vpack.c.bf16 %v216_v55, %v216_v55 }
 0x16d   :  { %572 = vmatmul.mubr.bf16.vlgmr.msra.gmra.mrb[0].mxu1 %v233_v56 }
 0x240   :  { %v316_v2 = vpop.f32.mrb[0].mxu1 }
 0x241   :  { %v322_v3 = vrot.slane %v316_v2, 4  ;;  %v329_v4 = vmul.f32 %v316_v2, %v316_v2  ;;  %v573_v5 = vpop.f32.mrb[1].mxu1 }
 0x242   :  { %v319_v6 = vpop.f32.mrb[2].mxu1 }
 0x243   :  { %v323_v7 = vadd.f32 %v322_v3, %v316_v2  ;;  %v330_v8 = vrot.slane %v329_v4, 4  ;;  %v574_v9 = vpop.f32.mrb[3].mxu1 }
 0x245   :  { %v324_v10 = vrot.slane %v323_v7, 2  ;;  %v331_v11 = vadd.f32 %v330_v8, %v329_v4 }
 0x247   :  { %v325_v12 = vadd.f32 %v324_v10, %v323_v7  ;;  %v332_v13 = vrot.slane %v331_v11, 2 }
 0x249   :  { %v326_v14 = vrot.slane %v325_v12, 1  ;;  %v333_v15 = vadd.f32 %v332_v13, %v331_v11 }
 0x24b   :  { %v327_v16 = vadd.f32 %v326_v14, %v325_v12  ;;  %v334_v17 = vrot.slane %v333_v15, 1 }
 0x24d   :  { %v328_v18 = vmul.f32 0.125, %v327_v16  ;;  %v335_v19 = vadd.f32 %v334_v17, %v333_v15 }
 0x24f   :  { %v336_v0 = vmul.f32 0.125, %v335_v19  ;;  %v337_v20 = vmul.f32 %v328_v18, %v328_v18  ;;  %v343_v28 = vsub.f32 %v316_v2, %v328_v18 }
 0x251   :  { %v338_v21 = vsub.f32 %v336_v0, %v337_v20 }
 0x253   :  { %v339_v22 = vmax.f32 %v338_v21, 0.0 }
 0x255   :  { %v340_v23 = vadd.f32 1e-05, %v339_v22 }
 0x257   :  { %630 = vrsqrt.f32 %v340_v23 }
 0x261   :  { %v631_v26 = vpop.eup %630 }
 0x262   :  { %v342_v27 = vmul.f32 %v631_v26, %v874_v44 }
 0x264   :  { %v347_v29 = vrot.slane %v342_v27, %v346_v24 }
 0x266   :  { %v348_v31 = vmul.f32 %v347_v29, %v343_v28 }
 0x268   :  { %v353_v32 = vadd.f32 %v352_v30, %v348_v31 }
 0x26a   :  { %vm354_vm2 = vcmp.gt.f32.partialorder %v353_v32, 0.0  ;;  %v355_v33 = vmul.f32 0.1, %v353_v32 }
 0x26c   :  { %v356_v34 = vsel %vm354_vm2, %v353_v32, %v355_v33 }
 0x26d   :  { %v373_v35 = vpack.c.bf16 %v356_v34, %v356_v34 }
 0x26f   :  { %592 = vmatmul.mubr.bf16.vlgmr.msra.gmra.mrb[4].mxu0 %v373_v35 }
 0x342   :  { %v460_v38 = vpop.f32.mrb[4].mxu0 }
 0x343   :  { %v461_v39 = vadd.f32 %v460_v38, %v377_v37  ;;  %v593_v40 = vpop.f32.mrb[5].mxu0 }
 0x344   :  { %v463_v41 = vpop.f32.mrb[6].mxu0 }
 0x345   :  { %466 = vst [vmem:[#allocation10] sm:$0xff] %v461_v39  ;;  %v594_v42 = vpop.f32.mrb[7].mxu0 }
 0x346   :  { %731 = shalt.err (!%p728_p8)
}
 0x347   :  { %s732_s19 = scalar_lea.hbm %s910_s5, 128 }
 0x348   :  { %p733_p9 = scmp.ne.s32.totalorder %s910_s5, %s732_s19  ;;  %p736_p10 = scmp.lt.u32.totalorder %s732_s19, %s910_s5 }
 0x34a   :  { %p738_p11 = pnand %p736_p10, %p733_p9 }
 0x34c   :  { %741 = shalt.err (!%p738_p11)
}
 0x34d   :  { %476 = dma.vmem_to_hbm [thread:$0]  %s474_s29, 128, %s910_s5, [#allocation4]  }
 0x34e   :  { %748 = dma.done.wait [#allocation4], 128  }
 0x34f   :  { %749 = vsyncadd [#allocation4], 4294967168 }
 0x350   :  { %480 = vsyncpa [#allocation3], 1 }
 0x351   :  { %481 = vsyncpa [#allocation6], 1 }
 0x352   :  { %482 = vsyncpa [#allocation9], 1 }
 0x353   :  { %483 = vsyncpa [#allocation4], 1 }

</bundles_post_ra>
